<compile_context>
chip_gen: v7x
topology: tpu7x:2x2x1
jax: 0.10.0
libtpu: 0.0.40
codegen_flags: <defaults>
</compile_context>

<pallas_src>
import jax
import jax.numpy as jnp
from jax.experimental import pallas as pl
from jax.experimental.pallas import tpu as pltpu


IN_FEATURES = 1024
HIDDEN = 128
OUTPUT = 16

TILE_B_MAX = 1024       # max batch rows per grid step (fits v5e 16 MiB scoped VMEM)
SPLIT_THRESHOLD = 256   # batches >= this use >= 2 grid steps (v7x has 2 TensorCores)


def _classifier_kernel(x_ref, w1_ref, b1_ref, w2_ref, b2_ref, o_ref):
    # x_ref : (tile_b, 1024) f32   -> cast to bf16 in-register (no extra HBM pass)
    # w1_ref: (1024, 128)  bf16    b1_ref: (1, 128) f32
    # w2_ref: (128, out)   bf16    b2_ref: (1, out) f32
    # o_ref : (tile_b, out) f32
    x_bf = x_ref[...].astype(jnp.bfloat16)
    h = jnp.dot(x_bf, w1_ref[...], preferred_element_type=jnp.float32)
    h = h + b1_ref[...]
    # Dropout(p=0.5) in eval mode == identity.
    # TODO(synk): training-mode dropout would need pltpu.prng_seed/prng_random_bits.
    y = jnp.dot(h.astype(jnp.bfloat16), w2_ref[...],
                preferred_element_type=jnp.float32) + b2_ref[...]
    o_ref[...] = y.astype(o_ref.dtype)


def prepare_params(w1, b1, w2, b2):
    """One-time weight prep (hoisted out of the per-call path)."""
    return (
        w1.astype(jnp.bfloat16),                  # (1024, 128)
        b1.reshape(1, -1).astype(jnp.float32),    # (1, 128)
        w2.astype(jnp.bfloat16),                  # (128, out)
        b2.reshape(1, -1).astype(jnp.float32),    # (1, out)
    )


def _choose_tile_b(B):
    # Pick the tile count first so (a) the ragged last tile wastes at most a
    # few rows (never up to a full tile), and (b) large batches split into
    # >= 2 grid steps so the "parallel" batch axis can span both v7x TCs.
    num_tiles = pl.cdiv(B, TILE_B_MAX)
    if B >= SPLIT_THRESHOLD:
        num_tiles = max(num_tiles, 2)
    return ((pl.cdiv(B, num_tiles) + 7) // 8) * 8   # multiple of 8


def temporal_net_forward(x, params):
    """x: (B, 1024) float32 (or bfloat16) -> (B, out_dim) float32."""
    w1_bf, b1_2d, w2_bf, b2_2d = params
    B, F = x.shape
    assert F == IN_FEATURES
    hidden = w1_bf.shape[1]
    out_dim = w2_bf.shape[1]

    tile_b = _choose_tile_b(B)
    grid = (pl.cdiv(B, tile_b),)

    # Weight/bias BlockSpecs use constant index_maps so they are DMA'd once
    # and stay resident; x/out tiles are double-buffered by the pipeline.
    # Ragged boundary blocks (tile_b not dividing B) are clipped by Pallas:
    # out-of-bounds rows load garbage but their stores are masked.
    return pl.pallas_call(
        _classifier_kernel,
        out_shape=jax.ShapeDtypeStruct((B, out_dim), jnp.float32),
        grid=grid,
        in_specs=[
            pl.BlockSpec((tile_b, IN_FEATURES), lambda i: (i, 0)),
            pl.BlockSpec((IN_FEATURES, hidden), lambda i: (0, 0)),
            pl.BlockSpec((1, hidden), lambda i: (0, 0)),
            pl.BlockSpec((hidden, out_dim), lambda i: (0, 0)),
            pl.BlockSpec((1, out_dim), lambda i: (0, 0)),
        ],
        out_specs=pl.BlockSpec((tile_b, out_dim), lambda i: (i, 0)),
        compiler_params=pltpu.CompilerParams(
            dimension_semantics=("parallel",)),
    )(x, w1_bf, b1_2d, w2_bf, b2_2d)


def init_params(key):
    """Deterministic init matching nn.Linear's U(-1/sqrt(fan_in), 1/sqrt(fan_in))."""
    k1, k2, k3, k4 = jax.random.split(key, 4)
    bound1 = 1.0 / jnp.sqrt(IN_FEATURES)
    bound2 = 1.0 / jnp.sqrt(HIDDEN)
    # stored as (in_features, out_features), i.e. W^T relative to PyTorch
    w1 = jax.random.uniform(k1, (IN_FEATURES, HIDDEN), jnp.float32, -bound1, bound1)
    b1 = jax.random.uniform(k2, (HIDDEN,), jnp.float32, -bound1, bound1)
    w2 = jax.random.uniform(k3, (HIDDEN, OUTPUT), jnp.float32, -bound2, bound2)
    b2 = jax.random.uniform(k4, (OUTPUT,), jnp.float32, -bound2, bound2)
    return w1, b1, w2, b2


def reference_forward(x, w1, b1, w2, b2):
    # Matched-precision reference: bf16 matmul inputs, f32 accumulation.
    h = jnp.dot(x.astype(jnp.bfloat16), w1.astype(jnp.bfloat16),
                preferred_element_type=jnp.float32) + b1
    return jnp.dot(h.astype(jnp.bfloat16), w2.astype(jnp.bfloat16),
                   preferred_element_type=jnp.float32) + b2


def reference_forward_f32(x, w1, b1, w2, b2):
    h = x @ w1 + b1
    return h @ w2 + b2


if __name__ == "__main__":
    key = jax.random.PRNGKey(0)
    kx, kp = jax.random.split(key)

    B = 10  # small batch; deliberately not a multiple of 8 to exercise ragged tiles
    x = jax.random.normal(kx, (B, IN_FEATURES), jnp.float32)
    w1, b1, w2, b2 = init_params(kp)

    params = prepare_params(w1, b1, w2, b2)   # one-time weight prep
    out = temporal_net_forward(x, params)
    out = jax.block_until_ready(out)
    assert out.shape == (B, OUTPUT), out.shape

    ref = reference_forward(x, w1, b1, w2, b2)
    assert jnp.allclose(out, ref, atol=5e-3, rtol=5e-3), "mismatch vs bf16 reference"

    ref32 = reference_forward_f32(x, w1, b1, w2, b2)
    assert jnp.allclose(out, ref32, atol=5e-2, rtol=5e-2), "mismatch vs f32 reference"

    print("KERNEL_OK")
</pallas_src>

<mosaic_0001>
module attributes {stable_mosaic.version = 11 : i64} {
  func.func @_classifier_kernel(%arg0: i32, %arg1: memref<16x1024xf32, #tpu.memory_space<vmem>>, %arg2: memref<1024x128xbf16, #tpu.memory_space<vmem>>, %arg3: memref<1x128xf32, #tpu.memory_space<vmem>>, %arg4: memref<128x16xbf16, #tpu.memory_space<vmem>>, %arg5: memref<1x16xf32, #tpu.memory_space<vmem>>, %arg6: memref<16x16xf32, #tpu.memory_space<vmem>>) attributes {dimension_semantics = [#tpu.dimension_semantics<parallel>], iteration_bounds = array<i64: 1>, scalar_prefetch = 0 : i64, scratch_operands = 0 : i64, tpu.core_type = #tpu.core_type<tc>, window_params = [{transform_indices = @transform_0, window_bounds = array<i64: 16, 1024>}, {pipeline_mode = #tpu.pipeline_mode<synchronous>, transform_indices = @transform_1, window_bounds = array<i64: 1024, 128>}, {pipeline_mode = #tpu.pipeline_mode<synchronous>, transform_indices = @transform_2, window_bounds = array<i64: 1, 128>}, {pipeline_mode = #tpu.pipeline_mode<synchronous>, transform_indices = @transform_3, window_bounds = array<i64: 128, 16>}, {pipeline_mode = #tpu.pipeline_mode<synchronous>, transform_indices = @transform_4, window_bounds = array<i64: 1, 16>}, {transform_indices = @transform_5, window_bounds = array<i64: 16, 16>}]} {
    %c0 = arith.constant 0 : index
    %c0_0 = arith.constant 0 : index
    %0 = vector.load %arg1[%c0, %c0_0] : memref<16x1024xf32, #tpu.memory_space<vmem>>, vector<16x1024xf32>
    %1 = arith.truncf %0 : vector<16x1024xf32> to vector<16x1024xbf16>
    %c0_1 = arith.constant 0 : index
    %c0_2 = arith.constant 0 : index
    %2 = vector.load %arg2[%c0_1, %c0_2] : memref<1024x128xbf16, #tpu.memory_space<vmem>>, vector<1024x128xbf16>
    %cst = arith.constant dense<0.000000e+00> : vector<16x128xf32>
    %3 = tpu.matmul %1, %2, %cst {dimension_numbers = #tpu.dot_dimension_numbers<[1], [0], [0], [1], [0, 0, 1, 1], [], []>} : vector<16x1024xbf16>, vector<1024x128xbf16>, vector<16x128xf32> -> vector<16x128xf32>
    %c0_3 = arith.constant 0 : index
    %c0_4 = arith.constant 0 : index
    %4 = vector.load %arg3[%c0_3, %c0_4] : memref<1x128xf32, #tpu.memory_space<vmem>>, vector<1x128xf32>
    %5 = vector.broadcast %4 : vector<1x128xf32> to vector<16x128xf32>
    %6 = arith.addf %3, %5 : vector<16x128xf32>
    %7 = arith.truncf %6 : vector<16x128xf32> to vector<16x128xbf16>
    %c0_5 = arith.constant 0 : index
    %c0_6 = arith.constant 0 : index
    %8 = vector.load %arg4[%c0_5, %c0_6] : memref<128x16xbf16, #tpu.memory_space<vmem>>, vector<128x16xbf16>
    %cst_7 = arith.constant dense<0.000000e+00> : vector<16x16xf32>
    %9 = tpu.matmul %7, %8, %cst_7 {dimension_numbers = #tpu.dot_dimension_numbers<[1], [0], [0], [1], [0, 0, 1, 1], [], []>} : vector<16x128xbf16>, vector<128x16xbf16>, vector<16x16xf32> -> vector<16x16xf32>
    %c0_8 = arith.constant 0 : index
    %c0_9 = arith.constant 0 : index
    %10 = vector.load %arg5[%c0_8, %c0_9] : memref<1x16xf32, #tpu.memory_space<vmem>>, vector<1x16xf32>
    %11 = vector.broadcast %10 : vector<1x16xf32> to vector<16x16xf32>
    %12 = arith.addf %9, %11 : vector<16x16xf32>
    %c0_10 = arith.constant 0 : index
    %c0_11 = arith.constant 0 : index
    %13 = vector.load %arg6[%c0_10, %c0_11] : memref<16x16xf32, #tpu.memory_space<vmem>>, vector<16x16xf32>
    tpu.vector_store %arg6[%c0_10, %c0_11], %12 {strides = array<i32>} : memref<16x16xf32, #tpu.memory_space<vmem>>, vector<16x16xf32>,
    return
  }
  func.func @transform_0(%arg0: i32) -> (i32, i32) {
    %c0_i32 = arith.constant 0 : i32
    %c0_i32_0 = arith.constant 0 : i32
    return %arg0, %c0_i32 : i32, i32
  }
  func.func @transform_1(%arg0: i32) -> (i32, i32) {
    %c0_i32 = arith.constant 0 : i32
    %c0_i32_0 = arith.constant 0 : i32
    %c0_i32_1 = arith.constant 0 : i32
    return %c0_i32, %c0_i32_0 : i32, i32
  }
  func.func @transform_2(%arg0: i32) -> (i32, i32) {
    %c0_i32 = arith.constant 0 : i32
    %c0_i32_0 = arith.constant 0 : i32
    %c0_i32_1 = arith.constant 0 : i32
    return %c0_i32, %c0_i32_0 : i32, i32
  }
  func.func @transform_3(%arg0: i32) -> (i32, i32) {
    %c0_i32 = arith.constant 0 : i32
    %c0_i32_0 = arith.constant 0 : i32
    %c0_i32_1 = arith.constant 0 : i32
    return %c0_i32, %c0_i32_0 : i32, i32
  }
  func.func @transform_4(%arg0: i32) -> (i32, i32) {
    %c0_i32 = arith.constant 0 : i32
    %c0_i32_0 = arith.constant 0 : i32
    %c0_i32_1 = arith.constant 0 : i32
    return %c0_i32, %c0_i32_0 : i32, i32
  }
  func.func @transform_5(%arg0: i32) -> (i32, i32) {
    %c0_i32 = arith.constant 0 : i32
    %c0_i32_0 = arith.constant 0 : i32
    return %arg0, %c0_i32 : i32, i32
  }
}

</mosaic_0001>

<bundles_post_ra>
// kernel: tpu_custom_call.1
= control target key start
LH: loop header
LB: loop body
LE: loop exit
PB: predicated region body
PF: predicated region fallthrough
CT: control target
= control target key end

     0   :  { %10 = vsyncpa [#allocation3], 0  ;;  %s1342_s0 = inlined_call_operand.hbm [shape: f32[10,1024], index: 0, kind: input, shape index: {}]   ;;  %s1343_s1 = inlined_call_operand.hbm [shape: bf16[1024,128], index: 1, kind: input, shape index: {}]   ;;  %s1344_s2 = inlined_call_operand.vmem [shape: f32[1,128], index: 2, kind: input, shape index: {}]   ;;  %s1345_s3 = inlined_call_operand.vmem [shape: bf16[128,16], index: 3, kind: input, shape index: {}]   ;;  %s1346_s4 = inlined_call_operand.vmem [shape: f32[1,16], index: 4, kind: input, shape index: {}]   ;;  %s1347_s5 = inlined_call_operand.hbm [shape: f32[10,16], index: 5, kind: output, shape index: {}]  }
   0x1   :  { %11 = vsyncpa [#allocation6], 0 }
   0x2   :  { %12 = vsyncpa [#allocation4], 0  ;;  %s1236_s18 = smov [#allocation2]   ;;  %s1164_s22 = scalar_lea.hbm %s1342_s0, 2048 }
   0x3   :  { %s18_s19 = sshll.u32 %s1236_s18, 4  ;;  %p1165_p0 = scmp.ne.s32.totalorder %s1342_s0, %s1164_s22  ;;  %s19_s19 = int_to_ptr.vmem [resolvable:$true] %s18_s19 }
   0x4   :  { %p1168_p1 = scmp.lt.u32.totalorder %s1164_s22, %s1342_s0 }
   0x6   :  { %p1170_p2 = pnand %p1168_p1, %p1165_p0 }
   0x8   :  { %1173 = shalt.err (!%p1170_p2)
}
   0x9   :  { %s1174_s27 = scalar_lea.vmem %s19_s19, 2048  ;;  %p1179_p4 = scmp.lt.s32.totalorder %s19_s19, %s19_s19 }
   0xa   :  { %p1175_p3 = scmp.ne.s32.totalorder %s19_s19, %s1174_s27  ;;  %p1180_p5 = scmp.lt.s32.totalorder %s1174_s27, %s1174_s27 }
   0xc   :  { %p1181_p6 = por %p1180_p5, %p1179_p4 }
   0xe   :  { %p1182_p7 = pnand %p1181_p6, %p1175_p3 }
  0x10   :  { %1185 = shalt.err (!%p1182_p7)
}
  0x11   :  { %s1237_s28 = smov 1024   ;;  %s1238_s29 = smov 64  }
  0x12   :  { %24 = dma.hbm_to_vmem [thread:$0]  %s1342_s0, 2048, %s19_s19, [#allocation3], %s1237_s28, %s1237_s28, %s1238_s29  }
  0x13   :  { %s1239_s7 = smov [#allocation5]   ;;  %s1186_s11 = scalar_lea.hbm %s1343_s1, 8192 }
  0x14   :  { %s30_s8 = sshll.u32 %s1239_s7, 4  ;;  %p1187_p8 = scmp.ne.s32.totalorder %s1343_s1, %s1186_s11  ;;  %s31_s8 = int_to_ptr.vmem [resolvable:$true] %s30_s8 }
  0x15   :  { %p1190_p9 = scmp.lt.u32.totalorder %s1186_s11, %s1343_s1 }
  0x17   :  { %p1192_p10 = pnand %p1190_p9, %p1187_p8 }
  0x19   :  { %1195 = shalt.err (!%p1192_p10)
}
  0x1a   :  { %s1196_s16 = scalar_lea.vmem %s31_s8, 8192  ;;  %p1201_p12 = scmp.lt.s32.totalorder %s31_s8, %s31_s8 }
  0x1b   :  { %p1197_p11 = scmp.ne.s32.totalorder %s31_s8, %s1196_s16  ;;  %p1202_p13 = scmp.lt.s32.totalorder %s1196_s16, %s1196_s16 }
  0x1d   :  { %p1203_p0 = por %p1202_p13, %p1201_p12 }
  0x1f   :  { %p1204_p1 = pnand %p1203_p0, %p1197_p11 }
  0x21   :  { %1207 = shalt.err (!%p1204_p1)
}
  0x22   :  { %s1240_s0 = smov 4  }
  0x23   :  { %36 = dma.hbm_to_vmem [thread:$0]  %s1343_s1, 8192, %s31_s8, [#allocation6], %s1238_s29, %s1238_s29, %s1240_s0  }
  0x24   :  { %1230 = dma.done.wait [#allocation3], 2048  }
  0x25   :  { %1231 = vsyncadd [#allocation3], 4294965248 }
  0x26   :  { %1232 = dma.done.wait [#allocation6], 8192  }
  0x27   :  { %1233 = vsyncadd [#allocation6], 4294959104  ;;  %v1092_v0 = vld [vmem:[#allocation5 + $0x40] sm:$0xff]   ;;  %v1096_v4 = vld [vmem:[#allocation5 + $0x48] sm:$0xff]   ;;  %vm1242_vm0 = vmmov 0   ;;  %vm870_vm1 = vcmask 130048  }
  0x28   :  { %v1093_v1 = vld [vmem:[#allocation5 + $0xc0] sm:$0xff]   ;;  %965 = vmatprep.subr.bf16.mxu0 %v1092_v0  ;;  %v1097_v5 = vld [vmem:[#allocation5 + $0xc8] sm:$0xff]   ;;  %v1100_v8 = vld [vmem:[#allocation5 + $0x50] sm:$0xff]   ;;  %s1243_s11 = smov [#allocation7]  }
  0x29   :  { %v1094_v2 = vld [vmem:[#allocation5] sm:$0xff]   ;;  %987 = vmatprep.subr.bf16.mxu1 %v1093_v1  ;;  %v1098_v6 = vld [vmem:[#allocation5 + $0x8] sm:$0xff]   ;;  %v1101_v9 = vld [vmem:[#allocation5 + $0xd0] sm:$0xff]   ;;  %s878_s12 = sshll.u32 %s1243_s11, 4  ;;  %s879_s12 = int_to_ptr.vmem [resolvable:$true] %s878_s12 }
  0x2a   :  { %v1095_v3 = vld [vmem:[#allocation5 + $0x80] sm:$0xff]   ;;  %966 = vmatpush3.bf16.msra.mxu0 %v1094_v2  ;;  %v1099_v7 = vld [vmem:[#allocation5 + $0x88] sm:$0xff]   ;;  %v1102_v10 = vld [vmem:[#allocation5 + $0x10] sm:$0xff]   ;;  %s1208_s13 = scalar_lea.vmem %s879_s12, 256  ;;  %p1213_p3 = scmp.lt.s32.totalorder %s879_s12, %s879_s12 }
  0x2b   :  { %988 = vmatpush3.bf16.msra.mxu1 %v1095_v3  ;;  %967 = vmatprep.subr.bf16.mxu0 %v1096_v4  ;;  %v1103_v11 = vld [vmem:[#allocation5 + $0x90] sm:$0xff]   ;;  %v1104_v12 = vld [vmem:[#allocation5 + $0x58] sm:$0xff]   ;;  %v1108_v16 = vld [vmem:[#allocation5 + $0x60] sm:$0xff]   ;;  %p1209_p2 = scmp.ne.s32.totalorder %s879_s12, %s1208_s13  ;;  %p1214_p4 = scmp.lt.s32.totalorder %s1208_s13, %s1208_s13 }
  0x2c   :  { %989 = vmatprep.subr.bf16.mxu1 %v1097_v5  ;;  %v1105_v13 = vld [vmem:[#allocation5 + $0xd8] sm:$0xff]   ;;  %v1109_v17 = vld [vmem:[#allocation5 + $0xe0] sm:$0xff]   ;;  %v1112_v20 = vld [vmem:[#allocation5 + $0x68] sm:$0xff]  }
  0x2d   :  { %v1106_v14 = vld [vmem:[#allocation5 + $0x18] sm:$0xff]   ;;  %v1110_v18 = vld [vmem:[#allocation5 + $0x20] sm:$0xff]   ;;  %v1113_v21 = vld [vmem:[#allocation5 + $0xe8] sm:$0xff]   ;;  %p1215_p5 = por %p1214_p4, %p1213_p3 }
  0x2e   :  { %968 = vmatpush3.bf16.msra.mxu0 %v1098_v6  ;;  %v1107_v15 = vld [vmem:[#allocation5 + $0x98] sm:$0xff]   ;;  %v1111_v19 = vld [vmem:[#allocation5 + $0xa0] sm:$0xff]   ;;  %v1114_v22 = vld [vmem:[#allocation5 + $0x28] sm:$0xff]  }
  0x2f   :  { %990 = vmatpush3.bf16.msra.mxu1 %v1099_v7  ;;  %969 = vmatprep.subr.bf16.mxu0 %v1100_v8  ;;  %v1115_v23 = vld [vmem:[#allocation5 + $0xa8] sm:$0xff]   ;;  %v1116_v24 = vld [vmem:[#allocation5 + $0x70] sm:$0xff]   ;;  %v1120_v28 = vld [vmem:[#allocation5 + $0x78] sm:$0xff]   ;;  %p1216_p6 = pnand %p1215_p5, %p1209_p2 }
  0x30   :  { %991 = vmatprep.subr.bf16.mxu1 %v1101_v9  ;;  %v1117_v25 = vld [vmem:[#allocation5 + $0xf0] sm:$0xff]   ;;  %v1121_v29 = vld [vmem:[#allocation5 + $0xf8] sm:$0xff]   ;;  %v51_v32 = vld [vmem:[#allocation2 + $0x8] sm:$0xff] }
  0x31   :  { %v1118_v26 = vld [vmem:[#allocation5 + $0x30] sm:$0xff]   ;;  %v1122_v30 = vld [vmem:[#allocation5 + $0x38] sm:$0xff]   ;;  %v59_v33 = vld [vmem:[#allocation2 + $0x48] sm:$0xff] }
  0x32   :  { %970 = vmatpush3.bf16.msra.mxu0 %v1102_v10  ;;  %v1119_v27 = vld [vmem:[#allocation5 + $0xb0] sm:$0xff]   ;;  %v1123_v31 = vld [vmem:[#allocation5 + $0xb8] sm:$0xff]   ;;  %v67_v35 = vpack.c.bf16 %v59_v33, %v51_v32  ;;  %v50_v37 = vld [vmem:[#allocation2] sm:$0xff] }
  0x33   :  { %992 = vmatpush3.bf16.msra.mxu1 %v1103_v11  ;;  %971 = vmatprep.subr.bf16.mxu0 %v1104_v12  ;;  %v53_v34 = vld [vmem:[#allocation2 + $0x18] sm:$0xff]  ;;  %v58_v38 = vld [vmem:[#allocation2 + $0x40] sm:$0xff]  ;;  %v52_v41 = vld [vmem:[#allocation2 + $0x10] sm:$0xff] }
  0x34   :  { %993 = vmatprep.subr.bf16.mxu1 %v1105_v13  ;;  %v61_v36 = vld [vmem:[#allocation2 + $0x58] sm:$0xff]  ;;  %v66_v40 = vpack.c.bf16 %v58_v38, %v50_v37  ;;  %v60_v42 = vld [vmem:[#allocation2 + $0x50] sm:$0xff]  ;;  %625 = vmatprep.mubr.bf16.mxu0 %v67_v35  ;;  %v1124_v44 = vld [vmem:[#allocation5 + $0x140] sm:$0xff]  }
  0x35   :  { %v69_v39 = vpack.c.bf16 %v61_v36, %v53_v34  ;;  %v68_v43 = vpack.c.bf16 %v60_v42, %v52_v41  ;;  %v1125_v45 = vld [vmem:[#allocation5 + $0x1c0] sm:$0xff]   ;;  %v1128_v48 = vld [vmem:[#allocation5 + $0x148] sm:$0xff]   ;;  %v1132_v52 = vld [vmem:[#allocation5 + $0x150] sm:$0xff]  }
  0x36   :  { %972 = vmatpush3.bf16.msra.mxu0 %v1106_v14  ;;  %v1126_v46 = vld [vmem:[#allocation5 + $0x100] sm:$0xff]   ;;  %v1129_v49 = vld [vmem:[#allocation5 + $0x1c8] sm:$0xff]   ;;  %v1133_v53 = vld [vmem:[#allocation5 + $0x1d0] sm:$0xff]  }
  0x37   :  { %994 = vmatpush3.bf16.msra.mxu1 %v1107_v15  ;;  %973 = vmatprep.subr.bf16.mxu0 %v1108_v16  ;;  %v1127_v47 = vld [vmem:[#allocation5 + $0x180] sm:$0xff]   ;;  %v1130_v50 = vld [vmem:[#allocation5 + $0x108] sm:$0xff]   ;;  %v1134_v54 = vld [vmem:[#allocation5 + $0x110] sm:$0xff]  }
  0x38   :  { %995 = vmatprep.subr.bf16.mxu1 %v1109_v17  ;;  %666 = vmatprep.mubr.bf16.mxu1 %v69_v39  ;;  %v1131_v51 = vld [vmem:[#allocation5 + $0x188] sm:$0xff]   ;;  %v1135_v55 = vld [vmem:[#allocation5 + $0x190] sm:$0xff]   ;;  %v1136_v56 = vld [vmem:[#allocation5 + $0x158] sm:$0xff]  }
  0x39   :  { %v1137_v57 = vld [vmem:[#allocation5 + $0x1d8] sm:$0xff]   ;;  %v1140_v60 = vld [vmem:[#allocation5 + $0x160] sm:$0xff]   ;;  %v1144_v0 = vld [vmem:[#allocation5 + $0x168] sm:$0xff]  }
  0x3a   :  { %974 = vmatpush3.bf16.msra.mxu0 %v1110_v18  ;;  %v1138_v58 = vld [vmem:[#allocation5 + $0x118] sm:$0xff]   ;;  %v1141_v61 = vld [vmem:[#allocation5 + $0x1e0] sm:$0xff]   ;;  %v1145_v1 = vld [vmem:[#allocation5 + $0x1e8] sm:$0xff]  }
  0x3b   :  { %996 = vmatpush3.bf16.msra.mxu1 %v1111_v19  ;;  %975 = vmatprep.subr.bf16.mxu0 %v1112_v20  ;;  %v1139_v59 = vld [vmem:[#allocation5 + $0x198] sm:$0xff]   ;;  %v1142_v62 = vld [vmem:[#allocation5 + $0x120] sm:$0xff]   ;;  %v1146_v2 = vld [vmem:[#allocation5 + $0x128] sm:$0xff]  }
  0x3c   :  { %997 = vmatprep.subr.bf16.mxu1 %v1113_v21  ;;  %v1143_v63 = vld [vmem:[#allocation5 + $0x1a0] sm:$0xff]   ;;  %v1147_v3 = vld [vmem:[#allocation5 + $0x1a8] sm:$0xff]   ;;  %v1148_v4 = vld [vmem:[#allocation5 + $0x170] sm:$0xff]  }
  0x3d   :  { %v1149_v5 = vld [vmem:[#allocation5 + $0x1f0] sm:$0xff]   ;;  %v1152_v8 = vld [vmem:[#allocation5 + $0x178] sm:$0xff]   ;;  %v55_v12 = vld [vmem:[#allocation2 + $0x28] sm:$0xff] }
  0x3e   :  { %976 = vmatpush3.bf16.msra.mxu0 %v1114_v22  ;;  %v1150_v6 = vld [vmem:[#allocation5 + $0x130] sm:$0xff]   ;;  %v1153_v9 = vld [vmem:[#allocation5 + $0x1f8] sm:$0xff]   ;;  %v63_v13 = vld [vmem:[#allocation2 + $0x68] sm:$0xff] }
  0x3f   :  { %998 = vmatpush3.bf16.msra.mxu1 %v1115_v23  ;;  %977 = vmatprep.subr.bf16.mxu0 %v1116_v24  ;;  %v1151_v7 = vld [vmem:[#allocation5 + $0x1b0] sm:$0xff]   ;;  %v1154_v10 = vld [vmem:[#allocation5 + $0x138] sm:$0xff]   ;;  %v71_v16 = vpack.c.bf16 %v63_v13, %v55_v12  ;;  %v54_v18 = vld [vmem:[#allocation2 + $0x20] sm:$0xff] }
  0x40   :  { %999 = vmatprep.subr.bf16.mxu1 %v1117_v25  ;;  %v1155_v11 = vld [vmem:[#allocation5 + $0x1b8] sm:$0xff]   ;;  %v62_v19 = vld [vmem:[#allocation2 + $0x60] sm:$0xff]  ;;  %v56_v20 = vld [vmem:[#allocation2 + $0x30] sm:$0xff]  ;;  %v1241_v25 = vmov 0.0  }
  0x41   :  { %v57_v14 = vld [vmem:[#allocation2 + $0x38] sm:$0xff]  ;;  %v70_v21 = vpack.c.bf16 %v62_v19, %v54_v18  ;;  %v64_v22 = vld [vmem:[#allocation2 + $0x70] sm:$0xff]  ;;  %v1156_v24 = vld [vmem:[%s1345_s3] sm:$0xff]  }
  0x42   :  { %978 = vmatpush3.bf16.msra.mxu0 %v1118_v26  ;;  %v65_v15 = vld [vmem:[#allocation2 + $0x78] sm:$0xff]  ;;  %v72_v23 = vpack.c.bf16 %v64_v22, %v56_v20  ;;  %v1157_v26 = vld [vmem:[%s1345_s3 + $0x8] sm:$0xff]   ;;  %v891_v35 = vld [vmem:[%s1344_s2] ss:$0 sm:$0xff] }
  0x43   :  { %1000 = vmatpush3.bf16.msra.mxu1 %v1119_v27  ;;  %979 = vmatprep.subr.bf16.mxu0 %v1120_v28  ;;  %v73_v17 = vpack.c.bf16 %v65_v15, %v57_v14  ;;  %v1158_v27 = vld [vmem:[%s1345_s3 + $0x10] sm:$0xff]   ;;  %v1159_v28 = vld [vmem:[%s1345_s3 + $0x18] sm:$0xff]  }
  0x44   :  { %1001 = vmatprep.subr.bf16.mxu1 %v1121_v29  ;;  %v1160_v29 = vld [vmem:[%s1345_s3 + $0x20] sm:$0xff]   ;;  %v1163_v32 = vld [vmem:[%s1345_s3 + $0x38] sm:$0xff]  }
  0x46   :  { %980 = vmatpush3.bf16.msra.mxu0 %v1122_v30  ;;  %v1161_v30 = vld [vmem:[%s1345_s3 + $0x28] sm:$0xff]  }
  0x47   :  { %1002 = vmatpush3.bf16.msra.mxu1 %v1123_v31  ;;  %1009 = vmatprep.subr.bf16.mxu0 %v1124_v44  ;;  %v1162_v31 = vld [vmem:[%s1345_s3 + $0x30] sm:$0xff]  }
  0x48   :  { %1031 = vmatprep.subr.bf16.mxu1 %v1125_v45 }
  0x49   :  { %626 = vmatmul.mubr.bf16.vlgmr.msra.gmra.mrb[0].mxu0 %v66_v40 }
  0x4a   :  { %667 = vmatmul.mubr.bf16.vlgmr.msra.gmra.mrb[0].mxu1 %v68_v43  ;;  %1010 = vmatpush3.bf16.msra.mxu0 %v1126_v46 }
  0x4b   :  { %1032 = vmatpush3.bf16.msra.mxu1 %v1127_v47  ;;  %1011 = vmatprep.subr.bf16.mxu0 %v1128_v48 }
  0x4c   :  { %1033 = vmatprep.subr.bf16.mxu1 %v1129_v49  ;;  %707 = vmatprep.mubr.bf16.mxu0 %v71_v16 }
  0x4d   :  { %748 = vmatprep.mubr.bf16.mxu1 %v73_v17 }
  0x4e   :  { %1012 = vmatpush3.bf16.msra.mxu0 %v1130_v50 }
  0x4f   :  { %1034 = vmatpush3.bf16.msra.mxu1 %v1131_v51  ;;  %1013 = vmatprep.subr.bf16.mxu0 %v1132_v52 }
  0x50   :  { %1035 = vmatprep.subr.bf16.mxu1 %v1133_v53 }
  0x52   :  { %1014 = vmatpush3.bf16.msra.mxu0 %v1134_v54 }
  0x53   :  { %1036 = vmatpush3.bf16.msra.mxu1 %v1135_v55  ;;  %1015 = vmatprep.subr.bf16.mxu0 %v1136_v56 }
  0x54   :  { %1037 = vmatprep.subr.bf16.mxu1 %v1137_v57 }
  0x56   :  { %1016 = vmatpush3.bf16.msra.mxu0 %v1138_v58 }
  0x57   :  { %1038 = vmatpush3.bf16.msra.mxu1 %v1139_v59  ;;  %1017 = vmatprep.subr.bf16.mxu0 %v1140_v60 }
  0x58   :  { %1039 = vmatprep.subr.bf16.mxu1 %v1141_v61 }
  0x5a   :  { %1018 = vmatpush3.bf16.msra.mxu0 %v1142_v62 }
  0x5b   :  { %1040 = vmatpush3.bf16.msra.mxu1 %v1143_v63  ;;  %1019 = vmatprep.subr.bf16.mxu0 %v1144_v0 }
  0x5c   :  { %1041 = vmatprep.subr.bf16.mxu1 %v1145_v1 }
  0x5e   :  { %1020 = vmatpush3.bf16.msra.mxu0 %v1146_v2 }
  0x5f   :  { %1042 = vmatpush3.bf16.msra.mxu1 %v1147_v3  ;;  %1021 = vmatprep.subr.bf16.mxu0 %v1148_v4  ;;  %v956_v3 = vld [vmem:[%s1346_s4] ss:$0 sm:$0xff] }
  0x60   :  { %1043 = vmatprep.subr.bf16.mxu1 %v1149_v5 }
  0x62   :  { %1022 = vmatpush3.bf16.msra.mxu0 %v1150_v6 }
  0x63   :  { %1044 = vmatpush3.bf16.msra.mxu1 %v1151_v7  ;;  %1023 = vmatprep.subr.bf16.mxu0 %v1152_v8 }
  0x64   :  { %1045 = vmatprep.subr.bf16.mxu1 %v1153_v9 }
  0x66   :  { %1024 = vmatpush3.bf16.msra.mxu0 %v1154_v10 }
  0x67   :  { %1046 = vmatpush3.bf16.msra.mxu1 %v1155_v11  ;;  %1062 = vmatprep.subr.bf16.mxu0 %v1241_v25 }
  0x69   :  { %708 = vmatmul.mubr.bf16.vlgmr.msra.gmra.mrb[4].mxu0 %v70_v21 }
  0x6a   :  { %749 = vmatmul.mubr.bf16.vlgmr.msra.gmra.mrb[4].mxu1 %v72_v23  ;;  %1063 = vmatpush3.bf16.msra.mxu0 %v1156_v24 }
  0x6b   :  { %1064 = vmatprep.subr.bf16.mxu0 %v1241_v25  ;;  %1078 = vmatprep.mubr.msk.bf16.mxu0 %vm1242_vm0, %v1241_v25 }
  0x6e   :  { %1065 = vmatpush3.bf16.msra.mxu0 %v1157_v26 }
  0x6f   :  { %1066 = vmatprep.subr.bf16.mxu0 %v1241_v25 }
  0x72   :  { %1067 = vmatpush3.bf16.msra.mxu0 %v1158_v27 }
  0x73   :  { %1068 = vmatprep.subr.bf16.mxu0 %v1241_v25 }
  0x76   :  { %1069 = vmatpush3.bf16.msra.mxu0 %v1159_v28 }
  0x77   :  { %1070 = vmatprep.subr.bf16.mxu0 %v1241_v25 }
  0x7a   :  { %1071 = vmatpush3.bf16.msra.mxu0 %v1160_v29 }
  0x7b   :  { %1072 = vmatprep.subr.bf16.mxu0 %v1241_v25 }
  0x7e   :  { %1073 = vmatpush3.bf16.msra.mxu0 %v1161_v30 }
  0x7f   :  { %1074 = vmatprep.subr.bf16.mxu0 %v1241_v25 }
  0x82   :  { %1075 = vmatpush3.bf16.msra.mxu0 %v1162_v31 }
  0x83   :  { %1076 = vmatprep.subr.bf16.mxu0 %v1241_v25 }
  0x86   :  { %1077 = vmatpush3.bf16.msra.mxu0 %v1163_v32 }
 0x11c   :  { %v981_v33 = vpop.f32.mrb[0].mxu0 }
 0x11d   :  { %v1003_v34 = vpop.f32.mrb[0].mxu1  ;;  %v982_v36 = vpop.f32.mrb[1].mxu0 }
 0x11e   :  { %v983_v37 = vadd.f32 %v982_v36, %v981_v33  ;;  %v1004_v38 = vpop.f32.mrb[1].mxu1  ;;  %v984_v39 = vpop.f32.mrb[2].mxu0 }
 0x11f   :  { %v1005_v40 = vadd.f32 %v1004_v38, %v1003_v34  ;;  %v1006_v41 = vpop.f32.mrb[2].mxu1  ;;  %v985_v42 = vpop.f32.mrb[3].mxu0 }
 0x120   :  { %v628_v43 = vadd.f32 %v983_v37, %v891_v35  ;;  %v986_v44 = vadd.f32 %v985_v42, %v984_v39  ;;  %v1007_v45 = vpop.f32.mrb[3].mxu1 }
 0x121   :  { %v1008_v46 = vadd.f32 %v1007_v45, %v1006_v41 }
 0x122   :  { %v669_v47 = vadd.f32 %v1005_v40, %v628_v43  ;;  %v631_v48 = vadd.f32 %v986_v44, %v891_v35 }
 0x124   :  { %v672_v49 = vadd.f32 %v1008_v46, %v631_v48 }
 0x13c   :  { %v1025_v50 = vpop.f32.mrb[4].mxu0 }
 0x13d   :  { %v1047_v51 = vpop.f32.mrb[4].mxu1  ;;  %v1026_v52 = vpop.f32.mrb[5].mxu0 }
 0x13e   :  { %v1027_v53 = vadd.f32 %v1026_v52, %v1025_v50  ;;  %v1048_v54 = vpop.f32.mrb[5].mxu1  ;;  %v1028_v55 = vpop.f32.mrb[6].mxu0 }
 0x13f   :  { %v1049_v56 = vadd.f32 %v1048_v54, %v1047_v51  ;;  %v1050_v57 = vpop.f32.mrb[6].mxu1  ;;  %v1029_v58 = vpop.f32.mrb[7].mxu0 }
 0x140   :  { %v710_v59 = vadd.f32 %v1027_v53, %v669_v47  ;;  %v1030_v60 = vadd.f32 %v1029_v58, %v1028_v55  ;;  %v1051_v61 = vpop.f32.mrb[7].mxu1 }
 0x141   :  { %v1052_v62 = vadd.f32 %v1051_v61, %v1050_v57 }
 0x142   :  { %v751_v63 = vadd.f32 %v1049_v56, %v710_v59  ;;  %v713_v0 = vadd.f32 %v1030_v60, %v672_v49 }
 0x144   :  { %v754_v1 = vadd.f32 %v1052_v62, %v713_v0 }
 0x146   :  { %v757_v2 = vpack.c.bf16 %v754_v1, %v751_v63 }
 0x148   :  { %1079 = vmatmul.mubr.bf16.vlgmr.msra.gmra.mrb[8].mxu0 %v757_v2 }
 0x21b   :  { %v863_v4 = vpop.f32.mrb[8].mxu0 }
 0x21c   :  { %v864_v5 = vadd.f32 %v956_v3, %v863_v4  ;;  %v1080_v6 = vpop.f32.mrb[9].mxu0 }
 0x21d   :  { %v866_v7 = vpop.f32.mrb[10].mxu0 }
 0x21e   :  { %871 = vst.msk [vmem:[#allocation7] sm:$0xff] %vm870_vm1, %v864_v5  ;;  %v867_v8 = vadd.f32 %v956_v3, %v866_v7  ;;  %v1081_v9 = vpop.f32.mrb[11].mxu0 }
 0x220   :  { %872 = vst.msk [vmem:[#allocation7 + $0x8] sm:$0xff] %vm870_vm1, %v867_v8 }
 0x221   :  { %1219 = shalt.err (!%p1216_p6)
}
 0x222   :  { %s1220_s15 = scalar_lea.hbm %s1347_s5, 256 }
 0x223   :  { %p1221_p7 = scmp.ne.s32.totalorder %s1347_s5, %s1220_s15  ;;  %p1224_p8 = scmp.lt.u32.totalorder %s1220_s15, %s1347_s5 }
 0x225   :  { %p1226_p9 = pnand %p1224_p8, %p1221_p7 }
 0x227   :  { %1229 = shalt.err (!%p1226_p9)
}
 0x228   :  { %s1244_s1 = smov 128   ;;  %s1245_s19 = smov 8  }
 0x229   :  { %884 = dma.vmem_to_hbm [thread:$0]  %s879_s12, 256, %s1347_s5, [#allocation4], %s1244_s1, %s1244_s1, %s1245_s19  }
 0x22a   :  { %1234 = dma.done.wait [#allocation4], 256  }
 0x22b   :  { %1235 = vsyncadd [#allocation4], 4294967040 }
 0x22c   :  { %888 = vsyncpa [#allocation3], 1 }
 0x22d   :  { %889 = vsyncpa [#allocation6], 1 }
 0x22e   :  { %890 = vsyncpa [#allocation4], 1 }

</bundles_post_ra>
